<compile_context>
chip_gen: v7x
topology: tpu7x:2x2x1
jax: 0.10.0
libtpu: 0.0.40
codegen_flags: <defaults>
</compile_context>

<pallas_src>
import functools
import math

import jax
import jax.numpy as jnp
from jax import lax
from jax.experimental import pallas as pl
from jax.experimental.pallas import tpu as pltpu


def _corr_kernel(x1_ref, x2_ref, o_ref, *,
                 out_h, out_w, K, md, s1, s2, nd_rad):
    # x1_ref: (1, H1, W1, C)   input1 (channel-last), padded only by pad-md
    # x2_ref: (1, Hp, C, Wp)   input2 padded by pad_size, layout (row, C, col)
    # o_ref : (1, 1, Nd, out_h, out_w)   displacement row tj of the output
    nd = 2 * nd_rad + 1
    C = x1_ref.shape[3]
    Wp = x2_ref.shape[3]
    j_idx = pl.program_id(1)                 # tj = j_idx - nd_rad
    inv = jnp.float32(1.0 / (K * K * C))
    w_span = (out_w - 1) * s1 + 1
    base = md - nd_rad * s2                  # static, >= 0
    row2_base = base + j_idx * s2            # dynamic row offset into x2p

    # Band-selection index field, hoisted out of the row loop:
    # out[t, x] picks P[x, u] where u - x*s1 == base + t*s2 + ki.
    row_i = lax.broadcasted_iota(jnp.int32, (out_w, Wp), 0)
    col_i = lax.broadcasted_iota(jnp.int32, (out_w, Wp), 1)
    diff = col_i - row_i * s1

    @pl.loop(0, out_h)
    def _(y):
        acc = [None] * nd                    # Nd per-ti row accumulators (vregs)
        for kj in range(K):                  # static (K == 1 for PWC-Net)
            a_full = x1_ref[0, y * s1 + kj]                 # (W1, C)
            b_row = x2_ref[0, y * s1 + row2_base + kj]      # (C, Wp)
            for ki in range(K):
                if s1 == 1 and K == 1:
                    a = a_full                               # (out_w, C)
                else:
                    # TODO(synk): stride1 != 1 / K > 1 path is untested on HW;
                    # strided value-slice may lower to a relayout on Mosaic.
                    a = lax.slice(a_full, (ki, 0),
                                  (ki + w_span, a_full.shape[1]), (s1, 1))
                # MXU band matmul: P[x, u] = sum_c a[x, c] * b_row[c, u]
                p = lax.dot_general(
                    a, b_row,
                    dimension_numbers=(((1,), (0,)), ((), ())),
                    preferred_element_type=jnp.float32)      # (out_w, Wp) f32
                for t in range(nd):                          # static, Nd = 9
                    off = base + t * s2 + ki                 # static
                    contrib = jnp.sum(jnp.where(diff == off, p, 0.0), axis=1)
                    acc[t] = contrib if acc[t] is None else acc[t] + contrib
        for t in range(nd):
            o_ref[0, 0, t, pl.ds(y, 1), :] = (
                (acc[t] * inv).astype(o_ref.dtype)[None, :])


def _ceil_to(x, m):
    return -(-x // m) * m


def _block_vmem_bytes(shape, dtype):
    """Approximate VMEM footprint of one block ((8,128)-padded trailing dims)."""
    dims = list(shape)
    dims[-1] = _ceil_to(dims[-1], 128)
    if len(dims) >= 2:
        dims[-2] = _ceil_to(dims[-2], 8)
    n = 1
    for d in dims:
        n *= int(d)
    return n * jnp.dtype(dtype).itemsize


def correlation(input1, input2, *, pad_size=4, kernel_size=1,
                max_displacement=4, stride1=1, stride2=1, corr_multiply=1):
    """Pallas TPU implementation of Correlation.forward (NCHW in / NCHW out)."""
    if corr_multiply != 1:
        # TODO(synk): subtraction-based correlation (corr_multiply != 1) not implemented.
        raise NotImplementedError(
            "only multiplicative correlation (corr_multiply=1) is supported")
    assert input1.shape == input2.shape and input1.ndim == 4
    B, C, H, W = input1.shape
    K = kernel_size
    kr = (K - 1) // 2
    md = max_displacement
    if pad_size < md:
        raise ValueError("pad_size must be >= max_displacement")
    border = md + kr
    Hp, Wp = H + 2 * pad_size, W + 2 * pad_size
    out_h = int(math.ceil((Hp - 2 * border) / stride1))
    out_w = int(math.ceil((Wp - 2 * border) / stride1))
    nd_rad = md // stride2
    nd = 2 * nd_rad + 1
    D = nd * nd
    dtype = input1.dtype

    # Channel-last layouts so the per-row channel contraction is a native
    # (M, K) @ (K, N) MXU matmul with no in-kernel transposes.
    #   x1: (B, H1, W1, C) — input1 never reads the inner `md` ring of the
    #       padding, so it is padded only by the excess ep = pad_size - md.
    #   x2: (B, Hp, C, Wp) — padded by pad_size.
    # TODO(synk): do the zero-padding in-kernel (zero-init VMEM slab + offset
    # copy) to avoid the extra HBM round-trip of the padded/transposed tensors.
    ep = pad_size - md
    x1_cl = jnp.transpose(input1, (0, 2, 3, 1))                 # (B, H, W, C)
    if ep:
        x1_cl = jnp.pad(x1_cl, ((0, 0), (ep, ep), (ep, ep), (0, 0)))
    x2_cl = jnp.transpose(
        jnp.pad(input2, ((0, 0), (0, 0),
                         (pad_size, pad_size), (pad_size, pad_size))),
        (0, 2, 1, 3))                                           # (B, Hp, C, Wp)
    H1, W1 = x1_cl.shape[1], x1_cl.shape[2]

    kernel = functools.partial(
        _corr_kernel, out_h=out_h, out_w=out_w, K=K, md=md,
        s1=stride1, s2=stride2, nd_rad=nd_rad)

    # --- VMEM budget, clamped to the physical per-core capacity -------------
    blk1 = _block_vmem_bytes((1, H1, W1, C), dtype)
    blk2 = _block_vmem_bytes((1, Hp, C, Wp), dtype)
    blko = _block_vmem_bytes((1, 1, nd, out_h, out_w), dtype)
    try:
        cap = int(getattr(pltpu.get_tpu_info(), "vmem_capacity_bytes", 64 << 20))
    except Exception:  # pragma: no cover - conservative fallback
        cap = 64 << 20
    budget = cap - (4 << 20)

    in_pipe = {}
    need = 2 * (blk1 + blk2 + blko) + (4 << 20)
    if need > budget:
        # Inputs only change along the slow batch axis (one DMA per Nd compute
        # steps), so single-buffering them is nearly free and halves the
        # dominant VMEM term — matters on the 64 MiB v7x part.
        in_pipe = dict(pipeline_mode=pl.Buffered(1))
        need = (blk1 + blk2) + 2 * blko + (4 << 20)
    vmem_limit = int(min(max(need, 16 << 20), budget))
    # TODO(synk): if `need` still exceeds the budget (very large images on the
    # 64 MiB v7x part), add an out_h row-strip grid axis with overlapping x2
    # slabs instead of whole-image input blocks.
    # TODO(synk): for coarse pyramid levels (out_w << 128) lane occupancy of
    # the masked-diagonal extraction and the output stores is low; pack
    # multiple output rows per lane tile or W-tile the grid.

    out5 = pl.pallas_call(
        kernel,
        out_shape=jax.ShapeDtypeStruct((B, nd, nd, out_h, out_w), dtype),
        grid_spec=pltpu.PrefetchScalarGridSpec(
            num_scalar_prefetch=0,
            grid=(B, nd),                       # (batch, displacement row tj)
            in_specs=[
                pl.BlockSpec((1, H1, W1, C), lambda b, j: (b, 0, 0, 0), **in_pipe),
                pl.BlockSpec((1, Hp, C, Wp), lambda b, j: (b, 0, 0, 0), **in_pipe),
            ],
            out_specs=pl.BlockSpec((1, 1, nd, out_h, out_w),
                                   lambda b, j: (b, j, 0, 0, 0)),
        ),
        compiler_params=pltpu.CompilerParams(
            # Batch is the (megacore-shardable) parallel axis; tj is arbitrary
            # so the whole-image input blocks stay resident on one core.
            dimension_semantics=("parallel", "arbitrary"),
            vmem_limit_bytes=vmem_limit),
    )(x1_cl, x2_cl)

    return out5.reshape(B, D, out_h, out_w)


def _reference(input1, input2, *, pad_size=4, kernel_size=1,
               max_displacement=4, stride1=1, stride2=1):
    """Plain-JAX reference for the default (kernel_size=1, strides=1) config."""
    B, C, H, W = input1.shape
    pad_cfg = ((0, 0), (0, 0), (pad_size, pad_size), (pad_size, pad_size))
    x2p = jnp.pad(input2, pad_cfg)
    nd_rad = max_displacement // stride2
    outs = []
    for tj in range(-nd_rad, nd_rad + 1):
        for ti in range(-nd_rad, nd_rad + 1):
            win = x2p[:, :,
                      pad_size + tj: pad_size + tj + H,
                      pad_size + ti: pad_size + ti + W]
            outs.append(jnp.mean(input1 * win, axis=1))
    return jnp.stack(outs, axis=1)


if __name__ == "__main__":
    key = jax.random.PRNGKey(0)
    k1, k2 = jax.random.split(key)
    B, C, H, W = 2, 4, 16, 16
    # Round the inputs to bf16-representable values so the correctness check is
    # independent of the MXU's internal f32 pass precision.
    x1 = jax.random.normal(k1, (B, C, H, W), dtype=jnp.float32)
    x2 = jax.random.normal(k2, (B, C, H, W), dtype=jnp.float32)
    x1 = x1.astype(jnp.bfloat16).astype(jnp.float32)
    x2 = x2.astype(jnp.bfloat16).astype(jnp.float32)

    out = correlation(x1, x2, pad_size=4, kernel_size=1, max_displacement=4,
                      stride1=1, stride2=1, corr_multiply=1)
    out = jax.block_until_ready(out)

    ref = _reference(x1, x2, pad_size=4, kernel_size=1, max_displacement=4,
                     stride1=1, stride2=1)
    assert out.shape == (B, 81, H, W), out.shape
    err = float(jnp.max(jnp.abs(out - ref)))
    assert jnp.allclose(out, ref, atol=1e-4, rtol=1e-4), err
    print("KERNEL_OK")
</pallas_src>

<mosaic_0001>
module attributes {stable_mosaic.version = 11 : i64} {
  func.func @_corr_kernel(%arg0: i32, %arg1: i32, %arg2: memref<1x16x16x4xf32, #tpu.memory_space<vmem>>, %arg3: memref<1x24x4x24xf32, #tpu.memory_space<vmem>>, %arg4: memref<1x1x9x16x16xf32, #tpu.memory_space<vmem>>) attributes {dimension_semantics = [#tpu.dimension_semantics<parallel>, #tpu.dimension_semantics<arbitrary>], iteration_bounds = array<i64: 2, 9>, scalar_prefetch = 0 : i64, scratch_operands = 0 : i64, tpu.core_type = #tpu.core_type<tc>, window_params = [{transform_indices = @transform_0, window_bounds = array<i64: 1, 16, 16, 4>}, {transform_indices = @transform_1, window_bounds = array<i64: 1, 24, 4, 24>}, {transform_indices = @transform_2, window_bounds = array<i64: 1, 1, 9, 16, 16>}]} {
    %c1_i32 = arith.constant 1 : i32
    %0 = arith.muli %arg1, %c1_i32 : i32
    %c0_i32 = arith.constant 0 : i32
    %1 = arith.addi %c0_i32, %0 : i32
    %2 = tpu.iota {dimensions = array<i32: 0>} : vector<16x24xi32>
    %3 = tpu.iota {dimensions = array<i32: 1>} : vector<16x24xi32>
    %c1_i32_0 = arith.constant 1 : i32
    %4 = vector.broadcast %c1_i32_0 : i32 to vector<16x24xi32>
    %5 = arith.muli %2, %4 : vector<16x24xi32>
    %6 = arith.subi %3, %5 : vector<16x24xi32>
    %cst = arith.constant 2.500000e-01 : f32
    %c0_i32_1 = arith.constant 0 : i32
    %c16_i32 = arith.constant 16 : i32
    %7 = arith.addi %c0_i32_1, %c16_i32 : i32
    %c1_i32_2 = arith.constant 1 : i32
    scf.for %arg5 = %c0_i32_1 to %7 step %c1_i32_2  : i32 {
      %c1_i32_4 = arith.constant 1 : i32
      %8 = arith.muli %arg5, %c1_i32_4 : i32
      %c0_i32_5 = arith.constant 0 : i32
      %9 = arith.addi %c0_i32_5, %8 : i32
      %c1_i32_6 = arith.constant 1 : i32
      %10 = arith.muli %9, %c1_i32_6 : i32
      %c0_i32_7 = arith.constant 0 : i32
      %11 = arith.addi %10, %c0_i32_7 : i32
      %c0 = arith.constant 0 : index
      %12 = arith.index_cast %11 : i32 to index
      %c0_8 = arith.constant 0 : index
      %c0_9 = arith.constant 0 : index
      %13 = vector.load %arg2[%c0, %12, %c0_8, %c0_9] : memref<1x16x16x4xf32, #tpu.memory_space<vmem>>, vector<1x1x16x4xf32>
      %14 = vector.shape_cast %13 : vector<1x1x16x4xf32> to vector<16x4xf32>
      %c1_i32_10 = arith.constant 1 : i32
      %15 = arith.muli %9, %c1_i32_10 : i32
      %16 = arith.addi %15, %1 : i32
      %c0_i32_11 = arith.constant 0 : i32
      %17 = arith.addi %16, %c0_i32_11 : i32
      %c0_12 = arith.constant 0 : index
      %18 = arith.index_cast %17 : i32 to index
      %c0_13 = arith.constant 0 : index
      %c0_14 = arith.constant 0 : index
      %19 = vector.load %arg3[%c0_12, %18, %c0_13, %c0_14] : memref<1x24x4x24xf32, #tpu.memory_space<vmem>>, vector<1x1x4x24xf32>
      %20 = vector.shape_cast %19 : vector<1x1x4x24xf32> to vector<4x24xf32>
      %cst_15 = arith.constant dense<0.000000e+00> : vector<16x24xf32>
      %21 = tpu.matmul %14, %20, %cst_15 {dimension_numbers = #tpu.dot_dimension_numbers<[1], [0], [0], [1], [0, 0, 1, 1], [], []>} : vector<16x4xf32>, vector<4x24xf32>, vector<16x24xf32> -> vector<16x24xf32>
      %c0_i32_16 = arith.constant 0 : i32
      %22 = vector.broadcast %c0_i32_16 : i32 to vector<16x24xi32>
      %23 = arith.cmpi eq, %6, %22 : vector<16x24xi32>
      %cst_17 = arith.constant 0.000000e+00 : f32
      %24 = vector.broadcast %cst_17 : f32 to vector<16x24xf32>
      %25 = arith.select %23, %21, %24 : vector<16x24xi1>, vector<16x24xf32>
      %cst_18 = arith.constant dense<0.000000e+00> : vector<16xf32>
      %26 = vector.multi_reduction <add>, %25, %cst_18 [1] : vector<16x24xf32> to vector<16xf32>
      %c1_i32_19 = arith.constant 1 : i32
      %27 = vector.broadcast %c1_i32_19 : i32 to vector<16x24xi32>
      %28 = arith.cmpi eq, %6, %27 : vector<16x24xi32>
      %cst_20 = arith.constant 0.000000e+00 : f32
      %29 = vector.broadcast %cst_20 : f32 to vector<16x24xf32>
      %30 = arith.select %28, %21, %29 : vector<16x24xi1>, vector<16x24xf32>
      %cst_21 = arith.constant dense<0.000000e+00> : vector<16xf32>
      %31 = vector.multi_reduction <add>, %30, %cst_21 [1] : vector<16x24xf32> to vector<16xf32>
      %c2_i32 = arith.constant 2 : i32
      %32 = vector.broadcast %c2_i32 : i32 to vector<16x24xi32>
      %33 = arith.cmpi eq, %6, %32 : vector<16x24xi32>
      %cst_22 = arith.constant 0.000000e+00 : f32
      %34 = vector.broadcast %cst_22 : f32 to vector<16x24xf32>
      %35 = arith.select %33, %21, %34 : vector<16x24xi1>, vector<16x24xf32>
      %cst_23 = arith.constant dense<0.000000e+00> : vector<16xf32>
      %36 = vector.multi_reduction <add>, %35, %cst_23 [1] : vector<16x24xf32> to vector<16xf32>
      %c3_i32 = arith.constant 3 : i32
      %37 = vector.broadcast %c3_i32 : i32 to vector<16x24xi32>
      %38 = arith.cmpi eq, %6, %37 : vector<16x24xi32>
      %cst_24 = arith.constant 0.000000e+00 : f32
      %39 = vector.broadcast %cst_24 : f32 to vector<16x24xf32>
      %40 = arith.select %38, %21, %39 : vector<16x24xi1>, vector<16x24xf32>
      %cst_25 = arith.constant dense<0.000000e+00> : vector<16xf32>
      %41 = vector.multi_reduction <add>, %40, %cst_25 [1] : vector<16x24xf32> to vector<16xf32>
      %c4_i32 = arith.constant 4 : i32
      %42 = vector.broadcast %c4_i32 : i32 to vector<16x24xi32>
      %43 = arith.cmpi eq, %6, %42 : vector<16x24xi32>
      %cst_26 = arith.constant 0.000000e+00 : f32
      %44 = vector.broadcast %cst_26 : f32 to vector<16x24xf32>
      %45 = arith.select %43, %21, %44 : vector<16x24xi1>, vector<16x24xf32>
      %cst_27 = arith.constant dense<0.000000e+00> : vector<16xf32>
      %46 = vector.multi_reduction <add>, %45, %cst_27 [1] : vector<16x24xf32> to vector<16xf32>
      %c5_i32 = arith.constant 5 : i32
      %47 = vector.broadcast %c5_i32 : i32 to vector<16x24xi32>
      %48 = arith.cmpi eq, %6, %47 : vector<16x24xi32>
      %cst_28 = arith.constant 0.000000e+00 : f32
      %49 = vector.broadcast %cst_28 : f32 to vector<16x24xf32>
      %50 = arith.select %48, %21, %49 : vector<16x24xi1>, vector<16x24xf32>
      %cst_29 = arith.constant dense<0.000000e+00> : vector<16xf32>
      %51 = vector.multi_reduction <add>, %50, %cst_29 [1] : vector<16x24xf32> to vector<16xf32>
      %c6_i32 = arith.constant 6 : i32
      %52 = vector.broadcast %c6_i32 : i32 to vector<16x24xi32>
      %53 = arith.cmpi eq, %6, %52 : vector<16x24xi32>
      %cst_30 = arith.constant 0.000000e+00 : f32
      %54 = vector.broadcast %cst_30 : f32 to vector<16x24xf32>
      %55 = arith.select %53, %21, %54 : vector<16x24xi1>, vector<16x24xf32>
      %cst_31 = arith.constant dense<0.000000e+00> : vector<16xf32>
      %56 = vector.multi_reduction <add>, %55, %cst_31 [1] : vector<16x24xf32> to vector<16xf32>
      %c7_i32 = arith.constant 7 : i32
      %57 = vector.broadcast %c7_i32 : i32 to vector<16x24xi32>
      %58 = arith.cmpi eq, %6, %57 : vector<16x24xi32>
      %cst_32 = arith.constant 0.000000e+00 : f32
      %59 = vector.broadcast %cst_32 : f32 to vector<16x24xf32>
      %60 = arith.select %58, %21, %59 : vector<16x24xi1>, vector<16x24xf32>
      %cst_33 = arith.constant dense<0.000000e+00> : vector<16xf32>
      %61 = vector.multi_reduction <add>, %60, %cst_33 [1] : vector<16x24xf32> to vector<16xf32>
      %c8_i32 = arith.constant 8 : i32
      %62 = vector.broadcast %c8_i32 : i32 to vector<16x24xi32>
      %63 = arith.cmpi eq, %6, %62 : vector<16x24xi32>
      %cst_34 = arith.constant 0.000000e+00 : f32
      %64 = vector.broadcast %cst_34 : f32 to vector<16x24xf32>
      %65 = arith.select %63, %21, %64 : vector<16x24xi1>, vector<16x24xf32>
      %cst_35 = arith.constant dense<0.000000e+00> : vector<16xf32>
      %66 = vector.multi_reduction <add>, %65, %cst_35 [1] : vector<16x24xf32> to vector<16xf32>
      %67 = vector.broadcast %cst : f32 to vector<16xf32>
      %68 = arith.mulf %26, %67 : vector<16xf32>
      %69 = vector.shape_cast %68 : vector<16xf32> to vector<1x16xf32>
      %c0_36 = arith.constant 0 : index
      %c0_37 = arith.constant 0 : index
      %c0_38 = arith.constant 0 : index
      %70 = arith.index_cast %9 : i32 to index
      %c0_39 = arith.constant 0 : index
      %71 = vector.load %arg4[%c0_36, %c0_37, %c0_38, %70, %c0_39] : memref<1x1x9x16x16xf32, #tpu.memory_space<vmem>>, vector<1x1x1x1x16xf32>
      %72 = vector.shape_cast %71 : vector<1x1x1x1x16xf32> to vector<1x16xf32>
      %73 = vector.shape_cast %69 : vector<1x16xf32> to vector<1x1x1x1x16xf32>
      tpu.vector_store %arg4[%c0_36, %c0_37, %c0_38, %70, %c0_39], %73 {strides = array<i32>} : memref<1x1x9x16x16xf32, #tpu.memory_space<vmem>>, vector<1x1x1x1x16xf32>,
      %74 = vector.broadcast %cst : f32 to vector<16xf32>
      %75 = arith.mulf %31, %74 : vector<16xf32>
      %76 = vector.shape_cast %75 : vector<16xf32> to vector<1x16xf32>
      %c0_40 = arith.constant 0 : index
      %c0_41 = arith.constant 0 : index
      %c1 = arith.constant 1 : index
      %77 = arith.index_cast %9 : i32 to index
      %c0_42 = arith.constant 0 : index
      %78 = vector.load %arg4[%c0_40, %c0_41, %c1, %77, %c0_42] : memref<1x1x9x16x16xf32, #tpu.memory_space<vmem>>, vector<1x1x1x1x16xf32>
      %79 = vector.shape_cast %78 : vector<1x1x1x1x16xf32> to vector<1x16xf32>
      %80 = vector.shape_cast %76 : vector<1x16xf32> to vector<1x1x1x1x16xf32>
      tpu.vector_store %arg4[%c0_40, %c0_41, %c1, %77, %c0_42], %80 {strides = array<i32>} : memref<1x1x9x16x16xf32, #tpu.memory_space<vmem>>, vector<1x1x1x1x16xf32>,
      %81 = vector.broadcast %cst : f32 to vector<16xf32>
      %82 = arith.mulf %36, %81 : vector<16xf32>
      %83 = vector.shape_cast %82 : vector<16xf32> to vector<1x16xf32>
      %c0_43 = arith.constant 0 : index
      %c0_44 = arith.constant 0 : index
      %c2 = arith.constant 2 : index
      %84 = arith.index_cast %9 : i32 to index
      %c0_45 = arith.constant 0 : index
      %85 = vector.load %arg4[%c0_43, %c0_44, %c2, %84, %c0_45] : memref<1x1x9x16x16xf32, #tpu.memory_space<vmem>>, vector<1x1x1x1x16xf32>
      %86 = vector.shape_cast %85 : vector<1x1x1x1x16xf32> to vector<1x16xf32>
      %87 = vector.shape_cast %83 : vector<1x16xf32> to vector<1x1x1x1x16xf32>
      tpu.vector_store %arg4[%c0_43, %c0_44, %c2, %84, %c0_45], %87 {strides = array<i32>} : memref<1x1x9x16x16xf32, #tpu.memory_space<vmem>>, vector<1x1x1x1x16xf32>,
      %88 = vector.broadcast %cst : f32 to vector<16xf32>
      %89 = arith.mulf %41, %88 : vector<16xf32>
      %90 = vector.shape_cast %89 : vector<16xf32> to vector<1x16xf32>
      %c0_46 = arith.constant 0 : index
      %c0_47 = arith.constant 0 : index
      %c3 = arith.constant 3 : index
      %91 = arith.index_cast %9 : i32 to index
      %c0_48 = arith.constant 0 : index
      %92 = vector.load %arg4[%c0_46, %c0_47, %c3, %91, %c0_48] : memref<1x1x9x16x16xf32, #tpu.memory_space<vmem>>, vector<1x1x1x1x16xf32>
      %93 = vector.shape_cast %92 : vector<1x1x1x1x16xf32> to vector<1x16xf32>
      %94 = vector.shape_cast %90 : vector<1x16xf32> to vector<1x1x1x1x16xf32>
      tpu.vector_store %arg4[%c0_46, %c0_47, %c3, %91, %c0_48], %94 {strides = array<i32>} : memref<1x1x9x16x16xf32, #tpu.memory_space<vmem>>, vector<1x1x1x1x16xf32>,
      %95 = vector.broadcast %cst : f32 to vector<16xf32>
      %96 = arith.mulf %46, %95 : vector<16xf32>
      %97 = vector.shape_cast %96 : vector<16xf32> to vector<1x16xf32>
      %c0_49 = arith.constant 0 : index
      %c0_50 = arith.constant 0 : index
      %c4 = arith.constant 4 : index
      %98 = arith.index_cast %9 : i32 to index
      %c0_51 = arith.constant 0 : index
      %99 = vector.load %arg4[%c0_49, %c0_50, %c4, %98, %c0_51] : memref<1x1x9x16x16xf32, #tpu.memory_space<vmem>>, vector<1x1x1x1x16xf32>
      %100 = vector.shape_cast %99 : vector<1x1x1x1x16xf32> to vector<1x16xf32>
      %101 = vector.shape_cast %97 : vector<1x16xf32> to vector<1x1x1x1x16xf32>
      tpu.vector_store %arg4[%c0_49, %c0_50, %c4, %98, %c0_51], %101 {strides = array<i32>} : memref<1x1x9x16x16xf32, #tpu.memory_space<vmem>>, vector<1x1x1x1x16xf32>,
      %102 = vector.broadcast %cst : f32 to vector<16xf32>
      %103 = arith.mulf %51, %102 : vector<16xf32>
      %104 = vector.shape_cast %103 : vector<16xf32> to vector<1x16xf32>
      %c0_52 = arith.constant 0 : index
      %c0_53 = arith.constant 0 : index
      %c5 = arith.constant 5 : index
      %105 = arith.index_cast %9 : i32 to index
      %c0_54 = arith.constant 0 : index
      %106 = vector.load %arg4[%c0_52, %c0_53, %c5, %105, %c0_54] : memref<1x1x9x16x16xf32, #tpu.memory_space<vmem>>, vector<1x1x1x1x16xf32>
      %107 = vector.shape_cast %106 : vector<1x1x1x1x16xf32> to vector<1x16xf32>
      %108 = vector.shape_cast %104 : vector<1x16xf32> to vector<1x1x1x1x16xf32>
      tpu.vector_store %arg4[%c0_52, %c0_53, %c5, %105, %c0_54], %108 {strides = array<i32>} : memref<1x1x9x16x16xf32, #tpu.memory_space<vmem>>, vector<1x1x1x1x16xf32>,
      %109 = vector.broadcast %cst : f32 to vector<16xf32>
      %110 = arith.mulf %56, %109 : vector<16xf32>
      %111 = vector.shape_cast %110 : vector<16xf32> to vector<1x16xf32>
      %c0_55 = arith.constant 0 : index
      %c0_56 = arith.constant 0 : index
      %c6 = arith.constant 6 : index
      %112 = arith.index_cast %9 : i32 to index
      %c0_57 = arith.constant 0 : index
      %113 = vector.load %arg4[%c0_55, %c0_56, %c6, %112, %c0_57] : memref<1x1x9x16x16xf32, #tpu.memory_space<vmem>>, vector<1x1x1x1x16xf32>
      %114 = vector.shape_cast %113 : vector<1x1x1x1x16xf32> to vector<1x16xf32>
      %115 = vector.shape_cast %111 : vector<1x16xf32> to vector<1x1x1x1x16xf32>
      tpu.vector_store %arg4[%c0_55, %c0_56, %c6, %112, %c0_57], %115 {strides = array<i32>} : memref<1x1x9x16x16xf32, #tpu.memory_space<vmem>>, vector<1x1x1x1x16xf32>,
      %116 = vector.broadcast %cst : f32 to vector<16xf32>
      %117 = arith.mulf %61, %116 : vector<16xf32>
      %118 = vector.shape_cast %117 : vector<16xf32> to vector<1x16xf32>
      %c0_58 = arith.constant 0 : index
      %c0_59 = arith.constant 0 : index
      %c7 = arith.constant 7 : index
      %119 = arith.index_cast %9 : i32 to index
      %c0_60 = arith.constant 0 : index
      %120 = vector.load %arg4[%c0_58, %c0_59, %c7, %119, %c0_60] : memref<1x1x9x16x16xf32, #tpu.memory_space<vmem>>, vector<1x1x1x1x16xf32>
      %121 = vector.shape_cast %120 : vector<1x1x1x1x16xf32> to vector<1x16xf32>
      %122 = vector.shape_cast %118 : vector<1x16xf32> to vector<1x1x1x1x16xf32>
      tpu.vector_store %arg4[%c0_58, %c0_59, %c7, %119, %c0_60], %122 {strides = array<i32>} : memref<1x1x9x16x16xf32, #tpu.memory_space<vmem>>, vector<1x1x1x1x16xf32>,
      %123 = vector.broadcast %cst : f32 to vector<16xf32>
      %124 = arith.mulf %66, %123 : vector<16xf32>
      %125 = vector.shape_cast %124 : vector<16xf32> to vector<1x16xf32>
      %c0_61 = arith.constant 0 : index
      %c0_62 = arith.constant 0 : index
      %c8 = arith.constant 8 : index
      %126 = arith.index_cast %9 : i32 to index
      %c0_63 = arith.constant 0 : index
      %127 = vector.load %arg4[%c0_61, %c0_62, %c8, %126, %c0_63] : memref<1x1x9x16x16xf32, #tpu.memory_space<vmem>>, vector<1x1x1x1x16xf32>
      %128 = vector.shape_cast %127 : vector<1x1x1x1x16xf32> to vector<1x16xf32>
      %129 = vector.shape_cast %125 : vector<1x16xf32> to vector<1x1x1x1x16xf32>
      tpu.vector_store %arg4[%c0_61, %c0_62, %c8, %126, %c0_63], %129 {strides = array<i32>} : memref<1x1x9x16x16xf32, #tpu.memory_space<vmem>>, vector<1x1x1x1x16xf32>,
    }
    %c16_i32_3 = arith.constant 16 : i32
    return
  }
  func.func @transform_0(%arg0: i32, %arg1: i32) -> (i32, i32, i32, i32) {
    %c0_i32 = arith.constant 0 : i32
    %c0_i32_0 = arith.constant 0 : i32
    %c0_i32_1 = arith.constant 0 : i32
    %c0_i32_2 = arith.constant 0 : i32
    return %arg0, %c0_i32, %c0_i32_0, %c0_i32_1 : i32, i32, i32, i32
  }
  func.func @transform_1(%arg0: i32, %arg1: i32) -> (i32, i32, i32, i32) {
    %c0_i32 = arith.constant 0 : i32
    %c0_i32_0 = arith.constant 0 : i32
    %c0_i32_1 = arith.constant 0 : i32
    %c0_i32_2 = arith.constant 0 : i32
    return %arg0, %c0_i32, %c0_i32_0, %c0_i32_1 : i32, i32, i32, i32
  }
  func.func @transform_2(%arg0: i32, %arg1: i32) -> (i32, i32, i32, i32, i32) {
    %c0_i32 = arith.constant 0 : i32
    %c0_i32_0 = arith.constant 0 : i32
    %c0_i32_1 = arith.constant 0 : i32
    %c0_i32_2 = arith.constant 0 : i32
    return %arg0, %arg1, %c0_i32, %c0_i32_0, %c0_i32_1 : i32, i32, i32, i32, i32
  }
}

</mosaic_0001>

<bundles_post_ra>
// kernel: tpu_custom_call.1
= control target key start
LH: loop header
LB: loop body
LE: loop exit
PB: predicated region body
PF: predicated region fallthrough
CT: control target
= control target key end

     0   :  { %7 = vsyncpa [#allocation3], 0  ;;  %s1406_s0 = inlined_call_operand.vmem [shape: f32[2,16,16,4], index: 0, kind: input, shape index: {}]   ;;  %s1407_s1 = inlined_call_operand.hbm [shape: f32[2,24,4,24], index: 1, kind: input, shape index: {}]   ;;  %s1408_s2 = inlined_call_operand.hbm [shape: f32[2,9,9,16,16], index: 2, kind: output, shape index: {}]  }
   0x1   :  { %9 = vsyncpa [#allocation3 + $0x1], 0 }
   0x2   :  { %10 = vsyncpa [#allocation4], 0 }
   0x3   :  { %12 = vsyncpa [#allocation4 + $0x1], 0  ;;  %s1027_s9 = smov 0   ;;  %s1029_s10 = smov 0  }
   0x4   :  { %s1031_s11 = smov 0   ;;  %s1033_s12 = smov 0  }
   0x5   :  { %s1035_s13 = smov 0   ;;  %s1037_s14 = smov 0  }
   0x6   :  { %s1039_s15 = smov 0   ;;  %s1041_s16 = smov 0  }
   0x7   :  { %s1043_s17 = smov 0   ;;  %s1045_s18 = smov 0  }
   0x8   :  { %s1047_s19 = smov 0  }
   0x9 LB: > { %s691_s20 = sadd.s32 4294967295, %s1000_s19   ;;  %s692_s21 = sadd.s32 4294967294, %s1000_s19   ;;  %s1000_s19 = sphi %s1047_s19, %s18_s19   ;;  %s996_s18 = sphi %s1045_s18, %s1432_s18   ;;  %s992_s17 = sphi %s1043_s17, %s1431_s17   ;;  %s988_s16 = sphi %s1041_s16, %s1430_s16   ;;  %s984_s15 = sphi %s1039_s15, %s1429_s15   ;;  %s980_s14 = sphi %s1037_s14, %s1428_s14   ;;  %s976_s13 = sphi %s1035_s13, %s1427_s13   ;;  %s972_s12 = sphi %s1033_s12, %s1426_s12   ;;  %s968_s11 = sphi %s1031_s11, %s1425_s11   ;;  %s964_s10 = sphi %s1029_s10, %s1424_s10   ;;  %s960_s9 = sphi %s1027_s9, %s1423_s9  }
   0xa   : > { %s27_s22 = sadd.s32 1, %s992_s17  ;;  %s30_s23 = sadd.s32 1, %s996_s18 }
   0xb   : > { %p28_p0 = scmp.ge.s32.totalorder %s27_s22, 9  ;;  %s63_s24 = sadd.s32 1, %s980_s14 }
   0xc   : > { %p70_p1 = scmp.ne.s32.totalorder %s980_s14, %s976_s13  ;;  %p71_p2 = scmp.eq.s32.totalorder %s1000_s19, 0 }
   0xd   : > { %s1434_s22 = smov (%p28_p0, %s27_s22), 0  ;;  %s1436_s23 = smov (!%p28_p0, %s30_s23), %s996_s18 }
   0xe   : > { %p1091_p3 = por %p71_p2, %p70_p1  ;;  %p76_p4 = scmp.ne.s32.totalorder %s976_s13, %s972_s12 }
   0xf   : > { %p32_p5 = scmp.ge.s32.totalorder %s1436_s23, 2  ;;  %p77_p6 = scmp.eq.s32.totalorder %s691_s20, 0 }
  0x10   : > { %s87_s26 = ssub.s32 %s992_s17, %s1434_s22  ;;  %s91_s27 = sadd.s32 1, %s968_s11 }
  0x11   : > { %s1438_s23 = smov (%p32_p5, %s1436_s23), 0  ;;  %p1101_p7 = por %p77_p6, %p76_p4 }
  0x12   : > { %1413 = sst [smem:[#allocation8_spill]] %s1438_s23  ;;  %p101_p8 = scmp.ne.s32.totalorder %s968_s11, %s964_s10 }
  0x13   : > { %s60_s29 = ssub.s32 %s996_s18, %s1438_s23  ;;  %p102_p9 = scmp.eq.s32.totalorder %s691_s20, 17 }
  0x14   : > { %p61_p10 = scmp.eq.s32.totalorder %s60_s29, 0  ;;  %s88_s30 = sor.u32 %s87_s26, %s60_s29 }
  0x15   : > { %p89_p11 = scmp.eq.s32.totalorder %s88_s30, 0  ;;  %p1109_p12 = por %p102_p9, %p101_p8 }
  0x16   : > { %s1114_s4 = scalar_select %p61_p10, %s980_s14, %s63_s24  }
  0x17   : > { %s1415_s3 = scalar_select %p1109_p12, 1, 0 }
  0x18   : > { %s1117_s5 = scalar_select %p89_p11, %s968_s11, %s91_s27  }
  0x19   : > { %p107_p13 = scmp.ne.s32.totalorder %s964_s10, %s960_s9  ;;  %p108_p0 = scmp.eq.s32.totalorder %s692_s21, 17 }
  0x1a   : > { %p742_p1 = scmp.lt.s32.totalorder %s1000_s19, 18  ;;  %s136_s7 = sand.u32 1, %s980_s14  }
  0x1b   : > { %p1122_p2 = por %p108_p0, %p107_p13  ;;  %s724_s8 = smul.u32 96, %s136_s7 }
  0x1c   : > { %s725_s12 = smul.u32 1536, %s996_s18  ;;  %p1130_p4 = pnand %p742_p1, %p1091_p3 }
  0x1d   : > { %s1416_s6 = scalar_select %p1122_p2, 1, 0 }
  0x1e   : > { %s1137_s27 = scalar_lea.hbm %s1407_s1, %s725_s12  ;;  %s140_s21 = scalar_lea.vmem [#allocation2], %s724_s8 }
  0x1f   : > { %s147_s29 = sshll.u32 %s140_s21, 4  ;;  %s1142_s25 = scalar_lea.sflag [#allocation3], %s136_s7  ;;  %s1139_s29 = int_to_ptr.vmem [resolvable:$true] %s147_s29 }
  0x20   : > { %s844_s30 = scalar_lea.hbm %s1137_s27, 1536  ;;  %p846_p6 = pneg %p1130_p4 }
  0x21   : > { %p845_p3 = scmp.ne.s32.totalorder %s1137_s27, %s844_s30  ;;  %s849_s24 = scalar_lea.hbm %s1407_s1, 3072 }
  0x22   : > { %p850_p10 = scmp.lt.u32.totalorder %s1137_s27, %s1407_s1  ;;  %p851_p11 = scmp.lt.u32.totalorder %s849_s24, %s844_s30 }
  0x23   : > { %p847_p8 = pnand %p846_p6, %p845_p3  ;;  %p853_p0 = scmp.lt.u32.totalorder %s844_s30, %s1137_s27 }
  0x24   : > { %p852_p13 = por %p851_p11, %p850_p10 }
  0x25   : > { %p848_p9 = pneg %p847_p8 }
  0x26   : > { %p854_p1 = por %p853_p0, %p852_p13 }
  0x28   : > { %p855_p5 = pnand %p854_p1, %p848_p9 }
  0x2a   : > { %858 = shalt.err (!%p855_p5)
}
  0x2b   : > { %s859_s7 = scalar_lea.vmem %s1139_s29, 1536  ;;  %s1006_s21 = smov [#allocation2]  }
  0x2c   : > { %p860_p3 = scmp.ne.s32.totalorder %s1139_s29, %s859_s7  ;;  %s864_s12 = sshll.u32 %s1006_s21, 4  ;;  %s865_s12 = int_to_ptr.vmem [resolvable:$false] %s864_s12 }
  0x2d   : > { %s866_s23 = scalar_lea.vmem %s865_s12, 3072  ;;  %p867_p12 = scmp.lt.s32.totalorder %s1139_s29, %s865_s12 }
  0x2e   : > { %p862_p8 = pnand %p860_p3, %p846_p6  ;;  %p868_p10 = scmp.lt.s32.totalorder %s866_s23, %s859_s7 }
  0x30   : > { %p863_p2 = pneg %p862_p8  ;;  %p869_p11 = por %p868_p10, %p867_p12 }
  0x32   : > { %p870_p13 = pnand %p869_p11, %p863_p2 }
  0x34   : > { %873 = shalt.err (!%p870_p13)
}
  0x35   : > { %s1007_s30 = smov 64   ;;  %s1008_s26 = smov 4  }
  0x36   : > { %737 = dma.hbm_to_vmem [thread:$0]  (!%p1130_p4), %s1137_s27, 1536, %s1139_s29, %s1142_s25, %s1007_s30, %s1007_s30, %s1008_s26  }
  0x37   : > { %p155_p5 = scmp.lt.s32.totalorder %s1000_s19, 19  ;;  %p1418_p6 = scmp.ge.s32.totalorder %s1000_s19, 1 }
  0x39   : > { %p156_p9 = pnand %p1418_p6, %p155_p5 }
  0x3a   : > { %s161_s24 = sand.u32 (!%p156_p9), 1, %s976_s13  }
  0x3b   : > { %159 = sbr.rel (%p156_p9) target bundleno = 488 (0x1e8), region = 28  ;;  %s162_s7 = scalar_lea.sflag (!%p156_p9), [#allocation3], %s161_s24 }
  0x3c   : > { %s1174_s8 = smul.u32 (!%p156_p9), 96, %s161_s24 }
  0x3e   : > { %s165_s21 = scalar_lea.vmem (!%p156_p9), [#allocation2], %s1174_s8 }
  0x42   : > { %951 = dma.done.wait (%p1101_p7), %s162_s7, 1536  }
  0x43   : > { %953 = vsyncadd (%p1101_p7), %s162_s7, 4294965760  ;;  %s1411_s20 = sand.u32 1, %s964_s10   ;;  %p191_p12 = scmp.lt.s32.totalorder %s988_s16, 1  ;;  %v196_v0 = vlaneseq }
  0x44   : > { %s1185_s27 = smul.u32 144, %s1411_s20  ;;  %s1206_s26 = smov 0  }
  0x45   : > { %s192_s29 = scalar_select %p191_p12, %s988_s16, 1  ;;  %v1188_v1 = vshrl.u32 %v196_v0, 7  ;;  %v1190_v2 = vand.u32 127, %v196_v0 }
  0x46   : > { %s190_s30 = scalar_lea.vmem [#allocation5], %s1185_s27 }
  0x47   : > { %s715_s25 = sshll.u32 %s192_s29, 8  ;;  %v198_v3 = vadd.s32 8, %v1188_v1  ;;  %v1195_v4 = vsub.s32 %v1190_v2, %v1188_v1 }
  0x48   : > { %s1200_s23 = scalar_lea.vmem %s1406_s0, %s715_s25 }
  0x49   : > { %v1203_v5 = vsub.s32 %v1190_v2, %v198_v3 }
  0x4a LB: >> { %s213_s24 = sadd.s32 %s1004_s26, %s984_s15  ;;  %vm224_vm0 = vcmask 1043456   ;;  %s699_s29 = sshll.u32 %s1004_s26, 4  ;;  %vm217_vm1 = vcmask 31744   ;;  %vm307_vm4 = vcmask 195584   ;;  %vm303_vm6 = vcmp.eq.s32.totalorder %v1195_v4, 0  ;;  %s1004_s26 = sphi %s1206_s26, %s208_s26  }
  0x4b   : >> { %s700_s7 = sshll.u32 %s213_s24, 2  ;;  %s210_s28 = scalar_lea.vmem %s1200_s23, %s699_s29  ;;  %vm315_vm2 = vcmp.eq.s32.totalorder %v1203_v5, 1  ;;  %vm304_vm3 = vcmp.eq.s32.totalorder %v1203_v5, 0  ;;  %vm325_vm5 = vcmp.eq.s32.totalorder %v1203_v5, 2  ;;  %vm335_vm7 = vcmp.eq.s32.totalorder %v1203_v5, 3 }
  0x4c   : >> { %s215_s25 = scalar_lea.vmem %s165_s21, %s700_s7 [#allocation2]  ;;  %v211_v7 = vld [vmem:[%s210_s28] sm:$0xff]  ;;  %v212_v8 = vld [vmem:[%s210_s28 + $0x8] sm:$0xff]  ;;  %vm324_vm8 = vcmp.eq.s32.totalorder %v1195_v4, 2  ;;  %vm345_vm9 = vcmp.eq.s32.totalorder %v1203_v5, 4  ;;  %vm334_vm10 = vcmp.eq.s32.totalorder %v1195_v4, 3  ;;  %vm355_vm11 = vcmp.eq.s32.totalorder %v1203_v5, 5  ;;  %s1282_s12 = scalar_lea.vmem %s190_s30, %s1004_s26 [#allocation5] }
  0x4d   : >> { %v216_v6 = vld [vmem:[%s215_s25] sm:$0xf]  ;;  %721 = vmatprep.mubr.msk.f32.mxu0 %vm217_vm1, %v211_v7  ;;  %vm344_vm12 = vcmp.eq.s32.totalorder %v1195_v4, 4  ;;  %vm365_vm13 = vcmp.eq.s32.totalorder %v1203_v5, 6  ;;  %vm354_vm14 = vcmp.eq.s32.totalorder %v1195_v4, 5  ;;  %vm375_vm15 = vcmp.eq.s32.totalorder %v1203_v5, 7 }
  0x4e   : >> { %719 = vmatprep.subr.msk.mxu0 %vm224_vm0, %v216_v6  ;;  %v402_v47 = vadd.s32 4294967288, %v1190_v2  ;;  %s208_s26 = sadd.s32 1, %s1004_s26  }
  0x4f   : >> { %720 = vmatpush3.msk.msra.mxu0 %vm224_vm0, %v216_v6  ;;  %vm364_vm0 = vcmp.eq.s32.totalorder %v1195_v4, 6  ;;  %p205_p7 = scmp.ge.s32.totalorder %s208_s26, 16  }
  0x50   : >> { %722 = vmatmul.mubr.msk.f32.vlgmr.msra.gmra.mrb[0].mxu0 %vm217_vm1, %v212_v8  ;;  %vm314_vm1 = vcmp.eq.s32.totalorder %v1195_v4, 1  ;;  %v1277_v50 = vsub.s32 %v402_v47, %v1188_v1  ;;  %s728_s24 = smul.u32 (%p205_p7), 18, %s984_s15  ;;  %s565_s29 = sshll.u32 (%p205_p7), %s190_s30, 4  ;;  %s1336_s29 = int_to_ptr.vmem [resolvable:$true] %s565_s29 }
  0x51   : > { %s729_s7 = smul.u32 (%p205_p7), 162, %s988_s16  ;;  %s1419_s8 = sand.u32 (%p205_p7), 1, %s964_s10  }
  0x52   : > { %s1345_s21 = scalar_lea.sflag (%p205_p7), [#allocation4], %s1419_s8  ;;  %s874_s23 = scalar_lea.vmem (%p205_p7), %s1336_s29, 2304 }
  0x53   : > { %s562_s25 = sadd.s32 (%p205_p7), %s729_s7, %s728_s24  ;;  %p875_p2 = scmp.ne.s32.totalorder (%p205_p7), %s1336_s29, %s874_s23 }
  0x54   : > { %s712_s28 = sshll.u32 (%p205_p7), %s562_s25, 7  ;;  %p1420_p4 = scmp.ne.s32.totalorder (%p205_p7), %s1415_s3, 0 }
  0x55   : > { %s1341_s26 = scalar_lea.hbm (%p205_p7), %s1408_s2, %s712_s28  ;;  %s1009_s15 = smov (%p205_p7), [#allocation5]  }
  0x56   : > { %p876_p0 = pnand (%p205_p7), %p875_p2, %p1420_p4  ;;  %s878_s16 = sshll.u32 (%p205_p7), %s1009_s15, 4  ;;  %s879_s16 = int_to_ptr.vmem [resolvable:$false] %s878_s16 }
  0x57   : > { %s880_s27 = scalar_lea.vmem (%p205_p7), %s879_s16, 4608  ;;  %p881_p3 = scmp.lt.s32.totalorder (%p205_p7), %s1336_s29, %s879_s16 }
  0x58   : > { %p877_p1 = pneg (%p205_p7), %p876_p0  ;;  %p882_p8 = scmp.lt.s32.totalorder (%p205_p7), %s880_s27, %s874_s23 }
  0x5a   : > { %p883_p10 = por (%p205_p7), %p882_p8, %p881_p3 }
  0x5c   : > { %p884_p11 = pnand (%p205_p7), %p883_p10, %p877_p1 }
 0x123   : >> { %v1219_v9 = vpop.f32.mrb[0].mxu0 }
 0x124   : >> { %v1223_v10 = vpop.f32.mrb[1].mxu0  ;;  %v317_v11 = vsel %vm315_vm2, %v1219_v9, 0.0  ;;  %v306_v12 = vsel %vm304_vm3, %v1219_v9, 0.0  ;;  %v327_v15 = vsel %vm325_vm5, %v1219_v9, 0.0  ;;  %v337_v19 = vsel %vm335_vm7, %v1219_v9, 0.0 }
 0x125   : >> { %v321_v13 = vsel %vm307_vm4, %v317_v11, 0.0  ;;  %v311_v14 = vsel %vm307_vm4, %v306_v12, 0.0  ;;  %v305_v16 = vsel %vm303_vm6, %v1223_v10, 0.0  ;;  %v331_v17 = vsel %vm307_vm4, %v327_v15, 0.0 }
 0x126   : >> { %322 = vadd.xlane.f32.xlu1 %v321_v13  ;;  %312 = vadd.xlane.f32.xlu0 %v311_v14  ;;  %v308_v18 = vsel %vm307_vm4, %v305_v16, 0.0  ;;  %v326_v20 = vsel %vm324_vm8, %v1223_v10, 0.0  ;;  %v341_v21 = vsel %vm307_vm4, %v337_v19, 0.0  ;;  %v347_v23 = vsel %vm345_vm9, %v1219_v9, 0.0 }
 0x127   : >> { %v328_v22 = vsel %vm307_vm4, %v326_v20, 0.0  ;;  %v336_v24 = vsel %vm334_vm10, %v1223_v10, 0.0  ;;  %v351_v25 = vsel %vm307_vm4, %v347_v23, 0.0  ;;  %v357_v27 = vsel %vm355_vm11, %v1219_v9, 0.0 }
 0x128   : >> { %v338_v26 = vsel %vm307_vm4, %v336_v24, 0.0  ;;  %v346_v28 = vsel %vm344_vm12, %v1223_v10, 0.0  ;;  %v361_v29 = vsel %vm307_vm4, %v357_v27, 0.0  ;;  %v367_v31 = vsel %vm365_vm13, %v1219_v9, 0.0 }
 0x129   : >> { %v348_v30 = vsel %vm307_vm4, %v346_v28, 0.0  ;;  %v356_v32 = vsel %vm354_vm14, %v1223_v10, 0.0  ;;  %v371_v33 = vsel %vm307_vm4, %v367_v31, 0.0  ;;  %v377_v35 = vsel %vm375_vm15, %v1219_v9, 0.0 }
 0x12a   : >> { %332 = vadd.xlane.f32.xlu1 %v331_v17  ;;  %309 = vadd.xlane.f32.xlu0 %v308_v18  ;;  %v358_v34 = vsel %vm307_vm4, %v356_v32, 0.0  ;;  %v366_v36 = vsel %vm364_vm0, %v1223_v10, 0.0  ;;  %vm374_vm2 = vcmp.eq.s32.totalorder %v1195_v4, 7  ;;  %v381_v37 = vsel %vm307_vm4, %v377_v35, 0.0 }
 0x12b   : >> { %v368_v38 = vsel %vm307_vm4, %v366_v36, 0.0  ;;  %v316_v39 = vsel %vm314_vm1, %v1223_v10, 0.0  ;;  %v376_v40 = vsel %vm374_vm2, %v1223_v10, 0.0  ;;  %vm385_vm3 = vcmp.eq.s32.totalorder %v1203_v5, 8 }
 0x12c   : >> { %vm384_vm5 = vcmp.eq.s32.totalorder %v1195_v4, 8  ;;  %v318_v41 = vsel %vm307_vm4, %v316_v39, 0.0  ;;  %v378_v42 = vsel %vm307_vm4, %v376_v40, 0.0  ;;  %v387_v43 = vsel %vm385_vm3, %v1219_v9, 0.0 }
 0x12d   : >> { %v386_v44 = vsel %vm384_vm5, %v1223_v10, 0.0  ;;  %v391_v45 = vsel %vm307_vm4, %v387_v43, 0.0  ;;  %vm407_vm6 = vcmask 130112  }
 0x12e   : >> { %342 = vadd.xlane.f32.xlu1 %v341_v21  ;;  %329 = vadd.xlane.f32.xlu0 %v328_v22  ;;  %v388_v46 = vsel %vm307_vm4, %v386_v44, 0.0  ;;  %vm411_vm4 = vcmask 122880  }
 0x132   : >> { %352 = vadd.xlane.f32.xlu1 %v351_v25  ;;  %339 = vadd.xlane.f32.xlu0 %v338_v26 }
 0x136   : >> { %362 = vadd.xlane.f32.xlu1 %v361_v29  ;;  %349 = vadd.xlane.f32.xlu0 %v348_v30 }
 0x13a   : >> { %372 = vadd.xlane.f32.xlu1 %v371_v33  ;;  %359 = vadd.xlane.f32.xlu0 %v358_v34 }
 0x13e   : >> { %382 = vadd.xlane.f32.xlu1 %v381_v37  ;;  %369 = vadd.xlane.f32.xlu0 %v368_v38 }
 0x142   : >> { %319 = vadd.xlane.f32.xlu1 %v318_v41  ;;  %379 = vadd.xlane.f32.xlu0 %v378_v42 }
 0x146   : >> { %392 = vadd.xlane.f32.xlu1 %v391_v45  ;;  %389 = vadd.xlane.f32.xlu0 %v388_v46 }
 0x1b3   : >> { %v323_v48 = vpop.xlane.xlu1 %322  ;;  %v313_v49 = vpop.xlane.xlu0 %312 }
 0x1b4   : >> { %v395_v51 = vmul.f32 0.25, %v313_v49  ;;  %v414_v30 = vmul.f32 0.25, %v323_v48 }
 0x1b6   : >> { %v406_v55 = vrot.slane %v395_v51, %v1277_v50  ;;  %v424_v39 = vrot.slane %v414_v30, %v1277_v50 }
 0x1b7   : >> { %v333_v52 = vpop.xlane.xlu1 %332  ;;  %v310_v53 = vpop.xlane.xlu0 %309 }
 0x1b8   : >> { %v394_v54 = vmul.f32 0.25, %v310_v53  ;;  %v431_v56 = vmul.f32 0.25, %v333_v52 }
 0x1ba   : >> { %v401_v57 = vrot.slane %v394_v54, %v1195_v4  ;;  %v441_v62 = vrot.slane %v431_v56, %v1277_v50 }
 0x1bb   : >> { %v343_v58 = vpop.xlane.xlu1 %342  ;;  %v330_v59 = vpop.xlane.xlu0 %329 }
 0x1bc   : >> { %v408_v60 = vsel %vm407_vm6, %v406_v55, %v401_v57  ;;  %v430_v61 = vmul.f32 0.25, %v330_v59  ;;  %v448_v63 = vmul.f32 0.25, %v343_v58 }
 0x1bd   : >> { %412 = vst.msk [vmem:[%s1282_s12] sm:$0x1] %vm411_vm4, %v408_v60 }
 0x1be   : >> { %v437_v0 = vrot.slane %v430_v61, %v1195_v4  ;;  %v458_v9 = vrot.slane %v448_v63, %v1277_v50 }
 0x1bf   : >> { %v353_v3 = vpop.xlane.xlu1 %352  ;;  %v340_v6 = vpop.xlane.xlu0 %339 }
 0x1c0   : >> { %v442_v7 = vsel %vm407_vm6, %v441_v62, %v437_v0  ;;  %v447_v8 = vmul.f32 0.25, %v340_v6  ;;  %v465_v10 = vmul.f32 0.25, %v353_v3 }
 0x1c1   : >> { %705 = vst.msk [vmem:[%s1282_s12 + $0x20] sm:$0x1] %vm411_vm4, %v442_v7 }
 0x1c2   : >> { %v454_v11 = vrot.slane %v447_v8, %v1195_v4  ;;  %v475_v16 = vrot.slane %v465_v10, %v1277_v50 }
 0x1c3   : >> { %v363_v12 = vpop.xlane.xlu1 %362  ;;  %v350_v13 = vpop.xlane.xlu0 %349 }
 0x1c4   : >> { %v459_v14 = vsel %vm407_vm6, %v458_v9, %v454_v11  ;;  %v464_v15 = vmul.f32 0.25, %v350_v13  ;;  %v482_v17 = vmul.f32 0.25, %v363_v12 }
 0x1c5   : >> { %706 = vst.msk [vmem:[%s1282_s12 + $0x30] sm:$0x1] %vm411_vm4, %v459_v14 }
 0x1c6   : >> { %v471_v18 = vrot.slane %v464_v15, %v1195_v4  ;;  %v492_v23 = vrot.slane %v482_v17, %v1277_v50 }
 0x1c7   : >> { %v373_v19 = vpop.xlane.xlu1 %372  ;;  %v360_v20 = vpop.xlane.xlu0 %359 }
 0x1c8   : >> { %v476_v21 = vsel %vm407_vm6, %v475_v16, %v471_v18  ;;  %v481_v22 = vmul.f32 0.25, %v360_v20  ;;  %v499_v24 = vmul.f32 0.25, %v373_v19 }
 0x1c9   : >> { %707 = vst.msk [vmem:[%s1282_s12 + $0x40] sm:$0x1] %vm411_vm4, %v476_v21 }
 0x1ca   : >> { %v488_v25 = vrot.slane %v481_v22, %v1195_v4  ;;  %v509_v31 = vrot.slane %v499_v24, %v1277_v50 }
 0x1cb   : >> { %v383_v26 = vpop.xlane.xlu1 %382  ;;  %v370_v27 = vpop.xlane.xlu0 %369 }
 0x1cc   : >> { %v493_v28 = vsel %vm407_vm6, %v492_v23, %v488_v25  ;;  %v498_v29 = vmul.f32 0.25, %v370_v27  ;;  %v516_v32 = vmul.f32 0.25, %v383_v26 }
 0x1cd   : >> { %708 = vst.msk [vmem:[%s1282_s12 + $0x50] sm:$0x1] %vm411_vm4, %v493_v28 }
 0x1ce   : >> { %v505_v33 = vrot.slane %v498_v29, %v1195_v4  ;;  %v526_v40 = vrot.slane %v516_v32, %v1277_v50 }
 0x1cf   : >> { %v320_v34 = vpop.xlane.xlu1 %319  ;;  %v380_v35 = vpop.xlane.xlu0 %379 }
 0x1d0   : >> { %v510_v36 = vsel %vm407_vm6, %v509_v31, %v505_v33  ;;  %v413_v37 = vmul.f32 0.25, %v320_v34  ;;  %v515_v38 = vmul.f32 0.25, %v380_v35 }
 0x1d1   : >> { %709 = vst.msk [vmem:[%s1282_s12 + $0x60] sm:$0x1] %vm411_vm4, %v510_v36 }
 0x1d2   : >> { %v420_v41 = vrot.slane %v413_v37, %v1195_v4  ;;  %v522_v42 = vrot.slane %v515_v38, %v1195_v4 }
 0x1d3   : >> { %v393_v43 = vpop.xlane.xlu1 %392  ;;  %v390_v44 = vpop.xlane.xlu0 %389  ;;  %207 = sbr.rel (!%p205_p7) target bundleno = 74 (0x4a), region = 94 }
 0x1d4   : >> { %v425_v45 = vsel %vm407_vm6, %v424_v39, %v420_v41  ;;  %v527_v46 = vsel %vm407_vm6, %v526_v40, %v522_v42  ;;  %v533_v47 = vmul.f32 0.25, %v393_v43  ;;  %v532_v48 = vmul.f32 0.25, %v390_v44 }
 0x1d5   : >> { %704 = vst.msk [vmem:[%s1282_s12 + $0x10] sm:$0x1] %vm411_vm4, %v425_v45  ;;  %710 = vst.msk [vmem:[%s1282_s12 + $0x70] sm:$0x1] %vm411_vm4, %v527_v46 }
 0x1d6   : >> { %v543_v49 = vrot.slane %v533_v47, %v1277_v50  ;;  %v539_v51 = vrot.slane %v532_v48, %v1195_v4 }
 0x1d8   : >> { %v544_v52 = vsel %vm407_vm6, %v543_v49, %v539_v51 }
 0x1d9   : >> { %711 = vst.msk [vmem:[%s1282_s12 + $0x80] sm:$0x1] %vm411_vm4, %v544_v52 }
 0x1da   : > { %887 = shalt.err (!%p884_p11)
}
 0x1db   : > { %s888_s20 = scalar_lea.hbm %s1341_s26, 2304  ;;  %s892_s7 = scalar_lea.hbm %s1408_s2, 41472 }
 0x1dc   : > { %p889_p13 = scmp.ne.s32.totalorder %s1341_s26, %s888_s20  ;;  %p893_p9 = scmp.lt.u32.totalorder %s1341_s26, %s1408_s2 }
 0x1dd   : > { %p894_p12 = scmp.lt.u32.totalorder %s892_s7, %s888_s20  ;;  %p896_p2 = scmp.lt.u32.totalorder %s888_s20, %s1341_s26 }
 0x1de   : > { %p890_p5 = pnand %p889_p13, %p1420_p4 }
 0x1df   : > { %p895_p7 = por %p894_p12, %p893_p9 }
 0x1e0   : > { %p891_p6 = pneg %p890_p5 }
 0x1e1   : > { %p897_p0 = por %p896_p2, %p895_p7 }
 0x1e3   : > { %p898_p1 = pnand %p897_p0, %p891_p6 }
 0x1e5   : > { %901 = shalt.err (!%p898_p1)
}
 0x1e6   : > { %s1010_s12 = smov 128   ;;  %s1011_s8 = smov 8  }
 0x1e7   : > { %732 = dma.vmem_to_hbm [thread:$0]  (%p1420_p4), %s1336_s29, 2304, %s1341_s26, %s1345_s21, %s1010_s12, %s1010_s12, %s1011_s8  }
 0x1e8 PF: > { %p743_p3 = scmp.ge.s32.totalorder %s1000_s19, 2  ;;  %s580_s23 = sand.u32 1, %s960_s9  }
 0x1e9   : > { %p1421_p8 = scmp.ne.s32.totalorder %s1416_s6, 0  ;;  %s581_s15 = scalar_lea.sflag [#allocation4], %s580_s23 }
 0x1eb   : > { %p739_p10 = pnand %p743_p3, %p1421_p8 }
 0x1ed   : > { %955 = dma.done.wait (!%p739_p10), %s581_s15, 2304  }
 0x1ee   : > { %957 = vsyncadd (!%p739_p10), %s581_s15, 4294964992  ;;  %s18_s19 = sadd.s32 1, %s1000_s19   ;;  %s1422_s3 = sld [smem:[#allocation8_spill]] }
 0x1ef   : > { %p15_p11 = scmp.ge.s32.totalorder %s18_s19, 20   ;;  %s1423_s9 = smov %s964_s10 }
 0x1f0   : > { %s1424_s10 = smov %s968_s11  ;;  %s1425_s11 = smov %s1117_s5 }
 0x1f1   : > { %s1426_s12 = smov %s976_s13  ;;  %s1427_s13 = smov %s980_s14 }
 0x1f2   : > { %s1428_s14 = smov %s1114_s4  ;;  %s1429_s15 = smov %s992_s17 }
 0x1f3   : > { %s1430_s16 = smov %s996_s18  ;;  %s1431_s17 = smov %s1434_s22 }
 0x1f4   : > { %s1432_s18 = smov %s1422_s3  ;;  %17 = sbr.rel (!%p15_p11) target bundleno = 9 (0x9), region = 105 }
 0x1fb   :  { %586 = vsyncpa [#allocation3], 1 }
 0x1fc   :  { %588 = vsyncpa [#allocation3 + $0x1], 1 }
 0x1fd   :  { %589 = vsyncpa [#allocation4], 1 }
 0x1fe   :  { %591 = vsyncpa [#allocation4 + $0x1], 1 }

</bundles_post_ra>
